<compile_context>
chip_gen: v5e
topology: v5e:2x2
jax: 0.10.0
libtpu: 0.0.40
codegen_flags: <defaults>
</compile_context>

<pallas_src>
import functools

import numpy as np
import jax
import jax.numpy as jnp
from jax import lax
from jax.experimental import pallas as pl
from jax.experimental.pallas import tpu as pltpu

SIGMA = 1.0
MH_FACTOR = 2.0 / (np.sqrt(3.0 * SIGMA) * np.pi ** 0.25)
LANES = 128
STRIP = 16           # rows per in-kernel strip: (16,128) f32 = 2 vregs


def _cdiv(a, b):
    return -(-a // b)


def _round_up(a, b):
    return _cdiv(a, b) * b


def _make_wavelet_constants(n_scale, n_shift):
    # Matches Wavelet1D.__init__: ShiftScale1D(wavelet, n_scale, n_shift) with a
    # (wavelet, n_shift, n_scale) signature -> counts swapped.
    n_shift_eff, n_scale_eff = n_scale, n_shift
    _, J_grid = np.mgrid[-n_shift_eff:n_shift_eff + 1,
                         -n_scale_eff:n_scale_eff + 1]                     # (R, C)
    f1 = (2.0 ** (0.5 * J_grid)).astype(np.float32)                        # (R, C)
    f2_cols = (2.0 ** np.arange(-n_scale_eff, n_scale_eff + 1,
                                dtype=np.float64)).astype(np.float32)      # (C,)
    shift_rows = np.arange(-n_shift_eff, n_shift_eff + 1).astype(np.float32)  # (R,)
    return f1, f2_cols, shift_rows


def _wavelet1d_kernel(f2_ref, shift_ref, coef_ref, bias_ref, x_ref, o_ref, *, strip):
    # f2_ref    : SMEM (n_scales,)            2^J per scale column
    # shift_ref : SMEM (n_shifts,)            I per shift row
    # coef_ref  : SMEM (n_shifts*n_scales,)   MH_FACTOR * F1 * weight, row-major (shift, scale)
    # bias_ref  : SMEM (1,)
    # x_ref/o_ref: VMEM (block_rows, 128) f32 lane-dense blocks
    n_scales = f2_ref.shape[0]
    n_shifts = shift_ref.shape[0]
    n_strips = x_ref.shape[0] // strip

    # Hoisted broadcast of the Linear bias (seeds every strip accumulator).
    bias_vec = jnp.full((strip, LANES), bias_ref[0], dtype=jnp.float32)

    @pl.loop(0, n_strips)
    def _(s):
        r0 = pl.multiple_of(s * strip, strip)
        x = x_ref[pl.ds(r0, strip), :]                      # 2 vregs

        def scale_body(j, acc):
            u = f2_ref[j] * x                               # hoisted: 1 mul shared by all shifts
            for i in range(n_shifts):                       # fully unrolled inner loop
                a = u - shift_ref[i]
                a2 = a * a
                # mexican hat with sigma==1 and Linear weight folded into coef:
                #   contribution = coef[i,j] * (1 - a^2) * exp(-0.5 * a^2)
                acc = acc + (coef_ref[i * n_scales + j] * (1.0 - a2)) * jnp.exp(-0.5 * a2)
            return acc

        o_ref[pl.ds(r0, strip), :] = lax.fori_loop(0, n_scales, scale_body, bias_vec)


def wavelet1d_forward(x, weight=None, bias=None, n_scale=5, n_shift=5, block_rows=1024):
    """x: (N,) float32 -> (N,) float32, matching Wavelet1D.forward.

    weight/bias are the Linear(n_wavelet, 1) parameters; None reproduces the module's
    zero-initialization exactly.
    """
    x = jnp.asarray(x, jnp.float32)
    n = x.shape[0]

    f1, f2_cols, shift_rows = _make_wavelet_constants(n_scale, n_shift)
    n_shifts, n_scales = f1.shape
    n_wavelet = n_shifts * n_scales

    if weight is None:
        weight = jnp.zeros((n_wavelet,), jnp.float32)       # layer2.weight.data.fill_(0.0)
    if bias is None:
        bias = jnp.zeros((1,), jnp.float32)                 # layer2.bias.data.fill_(0.0)
    weight = jnp.asarray(weight, jnp.float32).reshape(n_wavelet)
    bias = jnp.asarray(bias, jnp.float32).reshape(1)

    # Host-side constant folding: coef[w] = MH_FACTOR * F1[w] * weight[w].
    coef = jnp.asarray(np.float32(MH_FACTOR) * f1.reshape(-1)) * weight    # (n_wavelet,)
    f2_j = jnp.asarray(f2_cols)
    shift_j = jnp.asarray(shift_rows)

    # ---- tiling: compute the block count first, then the block size ----
    rows_needed = max(1, _cdiv(n, LANES))
    block_rows = max(STRIP, _round_up(block_rows, STRIP))
    num_blocks = _cdiv(rows_needed, block_rows)
    if rows_needed > STRIP:
        num_blocks = max(num_blocks, 2)         # >=2 grid steps so v7x uses both TCs
    if num_blocks > 1 and num_blocks % 2 == 1:
        num_blocks += 1                         # even block count for 2-TC balance
    br = _round_up(_cdiv(rows_needed, num_blocks), STRIP)   # <16 rows padding per block
    n_rows = num_blocks * br
    n_pad = n_rows * LANES

    if n == n_pad:
        x_tiled = x.reshape(n_rows, LANES)                  # no extra HBM copy
    else:
        x_tiled = jnp.zeros((n_pad,), jnp.float32).at[:n].set(x).reshape(n_rows, LANES)

    kernel = functools.partial(_wavelet1d_kernel, strip=STRIP)

    out = pl.pallas_call(
        kernel,
        out_shape=jax.ShapeDtypeStruct((n_rows, LANES), jnp.float32),
        grid=(num_blocks,),
        in_specs=[
            pl.BlockSpec(memory_space=pltpu.MemorySpace.SMEM),   # f2 per scale
            pl.BlockSpec(memory_space=pltpu.MemorySpace.SMEM),   # shift per row
            pl.BlockSpec(memory_space=pltpu.MemorySpace.SMEM),   # folded coefficients
            pl.BlockSpec(memory_space=pltpu.MemorySpace.SMEM),   # bias
            pl.BlockSpec((br, LANES), lambda i: (i, 0)),         # x tile (lane-dense)
        ],
        out_specs=pl.BlockSpec((br, LANES), lambda i: (i, 0)),   # lane-dense output
        compiler_params=pltpu.CompilerParams(
            dimension_semantics=("parallel",)),
    )(f2_j, shift_j, coef, bias, x_tiled)

    # Padded elements are simply discarded (no reliance on padded-lane math).
    return out.reshape(-1)[:n]


def wavelet1d_reference(x, weight=None, bias=None, n_scale=5, n_shift=5):
    """Pure-JAX reference of the same forward pass (for validation)."""
    x = jnp.asarray(x, jnp.float32)
    f1, f2_cols, shift_rows = _make_wavelet_constants(n_scale, n_shift)
    R, C = f1.shape
    n_wavelet = R * C
    f1_flat = f1.reshape(-1)
    f2_flat = np.broadcast_to(f2_cols[None, :], (R, C)).reshape(-1)
    shift_flat = np.broadcast_to(shift_rows[:, None], (R, C)).reshape(-1)

    if weight is None:
        weight = jnp.zeros((n_wavelet,), jnp.float32)
    if bias is None:
        bias = jnp.zeros((1,), jnp.float32)
    weight = jnp.asarray(weight, jnp.float32).reshape(n_wavelet)
    bias = jnp.asarray(bias, jnp.float32).reshape(1)

    a = jnp.asarray(f2_flat)[None, :] * x[:, None] - jnp.asarray(shift_flat)[None, :]
    mh = MH_FACTOR * (1.0 - (a / SIGMA) ** 2) * jnp.exp(-a * a / (2.0 * SIGMA * SIGMA))
    feats = jnp.asarray(f1_flat)[None, :] * mh                               # (N, W)
    # elementwise reduce (avoids TPU matmul default-precision differences)
    return jnp.sum(feats * weight[None, :], axis=1) + bias[0]


if __name__ == "__main__":
    key = jax.random.PRNGKey(0)
    kx, kw, kb, kx2 = jax.random.split(key, 4)

    N = 3000
    x = jax.random.uniform(kx, (N,), jnp.float32, minval=-2.0, maxval=2.0)

    # 1) Exact module semantics: zero-initialized Linear -> output is exactly 0.
    y0 = jax.block_until_ready(wavelet1d_forward(x))
    assert y0.shape == (N,), y0.shape
    assert np.allclose(np.asarray(y0), 0.0), "zero-init Linear must give all-zero output"

    # 2) Non-vacuous check: random Linear weight/bias vs pure-JAX reference.
    n_wavelet = (2 * 5 + 1) * (2 * 5 + 1)
    w = jax.random.normal(kw, (n_wavelet,), jnp.float32)
    b = jax.random.normal(kb, (1,), jnp.float32)
    y1 = jax.block_until_ready(wavelet1d_forward(x, weight=w, bias=b))
    y_ref = wavelet1d_reference(x, weight=w, bias=b)
    np.testing.assert_allclose(np.asarray(y1), np.asarray(y_ref), atol=1e-4, rtol=1e-4)

    # 3) Exact-tiling (no-pad) path with multiple strips per block (96 rows -> 2 x 48).
    N2 = 12288
    x2 = jax.random.uniform(kx2, (N2,), jnp.float32, minval=-2.0, maxval=2.0)
    y2 = jax.block_until_ready(wavelet1d_forward(x2, weight=w, bias=b))
    y2_ref = wavelet1d_reference(x2, weight=w, bias=b)
    np.testing.assert_allclose(np.asarray(y2), np.asarray(y2_ref), atol=1e-4, rtol=1e-4)

    # 4) Small block_rows forcing several (even-count) grid steps.
    y3 = jax.block_until_ready(wavelet1d_forward(x2, weight=w, bias=b, block_rows=32))
    np.testing.assert_allclose(np.asarray(y3), np.asarray(y2_ref), atol=1e-4, rtol=1e-4)

    print("KERNEL_OK")
</pallas_src>

<mosaic_0001>
module attributes {stable_mosaic.version = 11 : i64} {
  func.func @_wavelet1d_kernel(%arg0: i32, %arg1: memref<11xf32, #tpu.memory_space<smem>>, %arg2: memref<11xf32, #tpu.memory_space<smem>>, %arg3: memref<121xf32, #tpu.memory_space<smem>>, %arg4: memref<1xf32, #tpu.memory_space<smem>>, %arg5: memref<16x128xf32, #tpu.memory_space<vmem>>, %arg6: memref<16x128xf32, #tpu.memory_space<vmem>>) attributes {dimension_semantics = [#tpu.dimension_semantics<parallel>], iteration_bounds = array<i64: 2>, scalar_prefetch = 0 : i64, scratch_operands = 0 : i64, tpu.core_type = #tpu.core_type<tc>, window_params = [{transform_indices = @transform_0, window_bounds = array<i64: 11>}, {transform_indices = @transform_1, window_bounds = array<i64: 11>}, {transform_indices = @transform_2, window_bounds = array<i64: 121>}, {transform_indices = @transform_3, window_bounds = array<i64: 1>}, {transform_indices = @transform_4, window_bounds = array<i64: 16, 128>}, {transform_indices = @transform_5, window_bounds = array<i64: 16, 128>}]} {
    %c0 = arith.constant 0 : index
    %0 = memref.load %arg4[%c0] : memref<1xf32, #tpu.memory_space<smem>>
    %1 = vector.broadcast %0 : f32 to vector<16x128xf32>
    %c0_i32 = arith.constant 0 : i32
    %c1_i32 = arith.constant 1 : i32
    %2 = arith.muli %c0_i32, %c1_i32 : i32
    %c0_i32_0 = arith.constant 0 : i32
    %3 = arith.addi %c0_i32_0, %2 : i32
    %c16_i32 = arith.constant 16 : i32
    %4 = arith.muli %3, %c16_i32 : i32
    %5 = tpu.assume_multiple %4, 16 : i32
    %6 = arith.index_cast %5 : i32 to index
    %c0_1 = arith.constant 0 : index
    %7 = vector.load %arg5[%6, %c0_1] : memref<16x128xf32, #tpu.memory_space<vmem>>, vector<16x128xf32>
    %c0_i32_2 = arith.constant 0 : i32
    %c11_i32 = arith.constant 11 : i32
    %8 = arith.addi %c0_i32_2, %c11_i32 : i32
    %c1_i32_3 = arith.constant 1 : i32
    %9 = scf.for %arg7 = %c0_i32_2 to %8 step %c1_i32_3 iter_args(%arg8 = %1) -> (vector<16x128xf32>)  : i32 {
      %12 = arith.index_cast %arg7 : i32 to index
      %13 = memref.load %arg1[%12] : memref<11xf32, #tpu.memory_space<smem>>
      %14 = vector.broadcast %13 : f32 to vector<16x128xf32>
      %15 = arith.mulf %14, %7 : vector<16x128xf32>
      %c0_7 = arith.constant 0 : index
      %16 = memref.load %arg2[%c0_7] : memref<11xf32, #tpu.memory_space<smem>>
      %17 = vector.broadcast %16 : f32 to vector<16x128xf32>
      %18 = arith.subf %15, %17 : vector<16x128xf32>
      %19 = arith.mulf %18, %18 : vector<16x128xf32>
      %c0_i32_8 = arith.constant 0 : i32
      %20 = arith.addi %c0_i32_8, %arg7 : i32
      %21 = arith.index_cast %20 : i32 to index
      %22 = memref.load %arg3[%21] : memref<121xf32, #tpu.memory_space<smem>>
      %cst = arith.constant 1.000000e+00 : f32
      %23 = vector.broadcast %cst : f32 to vector<16x128xf32>
      %24 = arith.subf %23, %19 : vector<16x128xf32>
      %25 = vector.broadcast %22 : f32 to vector<16x128xf32>
      %26 = arith.mulf %25, %24 : vector<16x128xf32>
      %cst_9 = arith.constant -5.000000e-01 : f32
      %27 = vector.broadcast %cst_9 : f32 to vector<16x128xf32>
      %28 = arith.mulf %27, %19 : vector<16x128xf32>
      %29 = math.exp %28 : vector<16x128xf32>
      %30 = arith.mulf %26, %29 : vector<16x128xf32>
      %31 = arith.addf %arg8, %30 : vector<16x128xf32>
      %c1 = arith.constant 1 : index
      %32 = memref.load %arg2[%c1] : memref<11xf32, #tpu.memory_space<smem>>
      %33 = vector.broadcast %32 : f32 to vector<16x128xf32>
      %34 = arith.subf %15, %33 : vector<16x128xf32>
      %35 = arith.mulf %34, %34 : vector<16x128xf32>
      %c11_i32_10 = arith.constant 11 : i32
      %36 = arith.addi %c11_i32_10, %arg7 : i32
      %37 = arith.index_cast %36 : i32 to index
      %38 = memref.load %arg3[%37] : memref<121xf32, #tpu.memory_space<smem>>
      %cst_11 = arith.constant 1.000000e+00 : f32
      %39 = vector.broadcast %cst_11 : f32 to vector<16x128xf32>
      %40 = arith.subf %39, %35 : vector<16x128xf32>
      %41 = vector.broadcast %38 : f32 to vector<16x128xf32>
      %42 = arith.mulf %41, %40 : vector<16x128xf32>
      %cst_12 = arith.constant -5.000000e-01 : f32
      %43 = vector.broadcast %cst_12 : f32 to vector<16x128xf32>
      %44 = arith.mulf %43, %35 : vector<16x128xf32>
      %45 = math.exp %44 : vector<16x128xf32>
      %46 = arith.mulf %42, %45 : vector<16x128xf32>
      %47 = arith.addf %31, %46 : vector<16x128xf32>
      %c2 = arith.constant 2 : index
      %48 = memref.load %arg2[%c2] : memref<11xf32, #tpu.memory_space<smem>>
      %49 = vector.broadcast %48 : f32 to vector<16x128xf32>
      %50 = arith.subf %15, %49 : vector<16x128xf32>
      %51 = arith.mulf %50, %50 : vector<16x128xf32>
      %c22_i32 = arith.constant 22 : i32
      %52 = arith.addi %c22_i32, %arg7 : i32
      %53 = arith.index_cast %52 : i32 to index
      %54 = memref.load %arg3[%53] : memref<121xf32, #tpu.memory_space<smem>>
      %cst_13 = arith.constant 1.000000e+00 : f32
      %55 = vector.broadcast %cst_13 : f32 to vector<16x128xf32>
      %56 = arith.subf %55, %51 : vector<16x128xf32>
      %57 = vector.broadcast %54 : f32 to vector<16x128xf32>
      %58 = arith.mulf %57, %56 : vector<16x128xf32>
      %cst_14 = arith.constant -5.000000e-01 : f32
      %59 = vector.broadcast %cst_14 : f32 to vector<16x128xf32>
      %60 = arith.mulf %59, %51 : vector<16x128xf32>
      %61 = math.exp %60 : vector<16x128xf32>
      %62 = arith.mulf %58, %61 : vector<16x128xf32>
      %63 = arith.addf %47, %62 : vector<16x128xf32>
      %c3 = arith.constant 3 : index
      %64 = memref.load %arg2[%c3] : memref<11xf32, #tpu.memory_space<smem>>
      %65 = vector.broadcast %64 : f32 to vector<16x128xf32>
      %66 = arith.subf %15, %65 : vector<16x128xf32>
      %67 = arith.mulf %66, %66 : vector<16x128xf32>
      %c33_i32 = arith.constant 33 : i32
      %68 = arith.addi %c33_i32, %arg7 : i32
      %69 = arith.index_cast %68 : i32 to index
      %70 = memref.load %arg3[%69] : memref<121xf32, #tpu.memory_space<smem>>
      %cst_15 = arith.constant 1.000000e+00 : f32
      %71 = vector.broadcast %cst_15 : f32 to vector<16x128xf32>
      %72 = arith.subf %71, %67 : vector<16x128xf32>
      %73 = vector.broadcast %70 : f32 to vector<16x128xf32>
      %74 = arith.mulf %73, %72 : vector<16x128xf32>
      %cst_16 = arith.constant -5.000000e-01 : f32
      %75 = vector.broadcast %cst_16 : f32 to vector<16x128xf32>
      %76 = arith.mulf %75, %67 : vector<16x128xf32>
      %77 = math.exp %76 : vector<16x128xf32>
      %78 = arith.mulf %74, %77 : vector<16x128xf32>
      %79 = arith.addf %63, %78 : vector<16x128xf32>
      %c4 = arith.constant 4 : index
      %80 = memref.load %arg2[%c4] : memref<11xf32, #tpu.memory_space<smem>>
      %81 = vector.broadcast %80 : f32 to vector<16x128xf32>
      %82 = arith.subf %15, %81 : vector<16x128xf32>
      %83 = arith.mulf %82, %82 : vector<16x128xf32>
      %c44_i32 = arith.constant 44 : i32
      %84 = arith.addi %c44_i32, %arg7 : i32
      %85 = arith.index_cast %84 : i32 to index
      %86 = memref.load %arg3[%85] : memref<121xf32, #tpu.memory_space<smem>>
      %cst_17 = arith.constant 1.000000e+00 : f32
      %87 = vector.broadcast %cst_17 : f32 to vector<16x128xf32>
      %88 = arith.subf %87, %83 : vector<16x128xf32>
      %89 = vector.broadcast %86 : f32 to vector<16x128xf32>
      %90 = arith.mulf %89, %88 : vector<16x128xf32>
      %cst_18 = arith.constant -5.000000e-01 : f32
      %91 = vector.broadcast %cst_18 : f32 to vector<16x128xf32>
      %92 = arith.mulf %91, %83 : vector<16x128xf32>
      %93 = math.exp %92 : vector<16x128xf32>
      %94 = arith.mulf %90, %93 : vector<16x128xf32>
      %95 = arith.addf %79, %94 : vector<16x128xf32>
      %c5 = arith.constant 5 : index
      %96 = memref.load %arg2[%c5] : memref<11xf32, #tpu.memory_space<smem>>
      %97 = vector.broadcast %96 : f32 to vector<16x128xf32>
      %98 = arith.subf %15, %97 : vector<16x128xf32>
      %99 = arith.mulf %98, %98 : vector<16x128xf32>
      %c55_i32 = arith.constant 55 : i32
      %100 = arith.addi %c55_i32, %arg7 : i32
      %101 = arith.index_cast %100 : i32 to index
      %102 = memref.load %arg3[%101] : memref<121xf32, #tpu.memory_space<smem>>
      %cst_19 = arith.constant 1.000000e+00 : f32
      %103 = vector.broadcast %cst_19 : f32 to vector<16x128xf32>
      %104 = arith.subf %103, %99 : vector<16x128xf32>
      %105 = vector.broadcast %102 : f32 to vector<16x128xf32>
      %106 = arith.mulf %105, %104 : vector<16x128xf32>
      %cst_20 = arith.constant -5.000000e-01 : f32
      %107 = vector.broadcast %cst_20 : f32 to vector<16x128xf32>
      %108 = arith.mulf %107, %99 : vector<16x128xf32>
      %109 = math.exp %108 : vector<16x128xf32>
      %110 = arith.mulf %106, %109 : vector<16x128xf32>
      %111 = arith.addf %95, %110 : vector<16x128xf32>
      %c6 = arith.constant 6 : index
      %112 = memref.load %arg2[%c6] : memref<11xf32, #tpu.memory_space<smem>>
      %113 = vector.broadcast %112 : f32 to vector<16x128xf32>
      %114 = arith.subf %15, %113 : vector<16x128xf32>
      %115 = arith.mulf %114, %114 : vector<16x128xf32>
      %c66_i32 = arith.constant 66 : i32
      %116 = arith.addi %c66_i32, %arg7 : i32
      %117 = arith.index_cast %116 : i32 to index
      %118 = memref.load %arg3[%117] : memref<121xf32, #tpu.memory_space<smem>>
      %cst_21 = arith.constant 1.000000e+00 : f32
      %119 = vector.broadcast %cst_21 : f32 to vector<16x128xf32>
      %120 = arith.subf %119, %115 : vector<16x128xf32>
      %121 = vector.broadcast %118 : f32 to vector<16x128xf32>
      %122 = arith.mulf %121, %120 : vector<16x128xf32>
      %cst_22 = arith.constant -5.000000e-01 : f32
      %123 = vector.broadcast %cst_22 : f32 to vector<16x128xf32>
      %124 = arith.mulf %123, %115 : vector<16x128xf32>
      %125 = math.exp %124 : vector<16x128xf32>
      %126 = arith.mulf %122, %125 : vector<16x128xf32>
      %127 = arith.addf %111, %126 : vector<16x128xf32>
      %c7 = arith.constant 7 : index
      %128 = memref.load %arg2[%c7] : memref<11xf32, #tpu.memory_space<smem>>
      %129 = vector.broadcast %128 : f32 to vector<16x128xf32>
      %130 = arith.subf %15, %129 : vector<16x128xf32>
      %131 = arith.mulf %130, %130 : vector<16x128xf32>
      %c77_i32 = arith.constant 77 : i32
      %132 = arith.addi %c77_i32, %arg7 : i32
      %133 = arith.index_cast %132 : i32 to index
      %134 = memref.load %arg3[%133] : memref<121xf32, #tpu.memory_space<smem>>
      %cst_23 = arith.constant 1.000000e+00 : f32
      %135 = vector.broadcast %cst_23 : f32 to vector<16x128xf32>
      %136 = arith.subf %135, %131 : vector<16x128xf32>
      %137 = vector.broadcast %134 : f32 to vector<16x128xf32>
      %138 = arith.mulf %137, %136 : vector<16x128xf32>
      %cst_24 = arith.constant -5.000000e-01 : f32
      %139 = vector.broadcast %cst_24 : f32 to vector<16x128xf32>
      %140 = arith.mulf %139, %131 : vector<16x128xf32>
      %141 = math.exp %140 : vector<16x128xf32>
      %142 = arith.mulf %138, %141 : vector<16x128xf32>
      %143 = arith.addf %127, %142 : vector<16x128xf32>
      %c8 = arith.constant 8 : index
      %144 = memref.load %arg2[%c8] : memref<11xf32, #tpu.memory_space<smem>>
      %145 = vector.broadcast %144 : f32 to vector<16x128xf32>
      %146 = arith.subf %15, %145 : vector<16x128xf32>
      %147 = arith.mulf %146, %146 : vector<16x128xf32>
      %c88_i32 = arith.constant 88 : i32
      %148 = arith.addi %c88_i32, %arg7 : i32
      %149 = arith.index_cast %148 : i32 to index
      %150 = memref.load %arg3[%149] : memref<121xf32, #tpu.memory_space<smem>>
      %cst_25 = arith.constant 1.000000e+00 : f32
      %151 = vector.broadcast %cst_25 : f32 to vector<16x128xf32>
      %152 = arith.subf %151, %147 : vector<16x128xf32>
      %153 = vector.broadcast %150 : f32 to vector<16x128xf32>
      %154 = arith.mulf %153, %152 : vector<16x128xf32>
      %cst_26 = arith.constant -5.000000e-01 : f32
      %155 = vector.broadcast %cst_26 : f32 to vector<16x128xf32>
      %156 = arith.mulf %155, %147 : vector<16x128xf32>
      %157 = math.exp %156 : vector<16x128xf32>
      %158 = arith.mulf %154, %157 : vector<16x128xf32>
      %159 = arith.addf %143, %158 : vector<16x128xf32>
      %c9 = arith.constant 9 : index
      %160 = memref.load %arg2[%c9] : memref<11xf32, #tpu.memory_space<smem>>
      %161 = vector.broadcast %160 : f32 to vector<16x128xf32>
      %162 = arith.subf %15, %161 : vector<16x128xf32>
      %163 = arith.mulf %162, %162 : vector<16x128xf32>
      %c99_i32 = arith.constant 99 : i32
      %164 = arith.addi %c99_i32, %arg7 : i32
      %165 = arith.index_cast %164 : i32 to index
      %166 = memref.load %arg3[%165] : memref<121xf32, #tpu.memory_space<smem>>
      %cst_27 = arith.constant 1.000000e+00 : f32
      %167 = vector.broadcast %cst_27 : f32 to vector<16x128xf32>
      %168 = arith.subf %167, %163 : vector<16x128xf32>
      %169 = vector.broadcast %166 : f32 to vector<16x128xf32>
      %170 = arith.mulf %169, %168 : vector<16x128xf32>
      %cst_28 = arith.constant -5.000000e-01 : f32
      %171 = vector.broadcast %cst_28 : f32 to vector<16x128xf32>
      %172 = arith.mulf %171, %163 : vector<16x128xf32>
      %173 = math.exp %172 : vector<16x128xf32>
      %174 = arith.mulf %170, %173 : vector<16x128xf32>
      %175 = arith.addf %159, %174 : vector<16x128xf32>
      %c10 = arith.constant 10 : index
      %176 = memref.load %arg2[%c10] : memref<11xf32, #tpu.memory_space<smem>>
      %177 = vector.broadcast %176 : f32 to vector<16x128xf32>
      %178 = arith.subf %15, %177 : vector<16x128xf32>
      %179 = arith.mulf %178, %178 : vector<16x128xf32>
      %c110_i32 = arith.constant 110 : i32
      %180 = arith.addi %c110_i32, %arg7 : i32
      %181 = arith.index_cast %180 : i32 to index
      %182 = memref.load %arg3[%181] : memref<121xf32, #tpu.memory_space<smem>>
      %cst_29 = arith.constant 1.000000e+00 : f32
      %183 = vector.broadcast %cst_29 : f32 to vector<16x128xf32>
      %184 = arith.subf %183, %179 : vector<16x128xf32>
      %185 = vector.broadcast %182 : f32 to vector<16x128xf32>
      %186 = arith.mulf %185, %184 : vector<16x128xf32>
      %cst_30 = arith.constant -5.000000e-01 : f32
      %187 = vector.broadcast %cst_30 : f32 to vector<16x128xf32>
      %188 = arith.mulf %187, %179 : vector<16x128xf32>
      %189 = math.exp %188 : vector<16x128xf32>
      %190 = arith.mulf %186, %189 : vector<16x128xf32>
      %191 = arith.addf %175, %190 : vector<16x128xf32>
      scf.yield %191 : vector<16x128xf32>
    }
    %c11_i32_4 = arith.constant 11 : i32
    %10 = arith.index_cast %5 : i32 to index
    %c0_5 = arith.constant 0 : index
    %11 = vector.load %arg6[%10, %c0_5] : memref<16x128xf32, #tpu.memory_space<vmem>>, vector<16x128xf32>
    tpu.vector_store %arg6[%10, %c0_5], %9 {strides = array<i32>} : memref<16x128xf32, #tpu.memory_space<vmem>>, vector<16x128xf32>,
    %c1_i32_6 = arith.constant 1 : i32
    return
  }
  func.func @transform_0(%arg0: i32) -> i32 {
    %c0_i32 = arith.constant 0 : i32
    %c0_i32_0 = arith.constant 0 : i32
    return %c0_i32 : i32
  }
  func.func @transform_1(%arg0: i32) -> i32 {
    %c0_i32 = arith.constant 0 : i32
    %c0_i32_0 = arith.constant 0 : i32
    return %c0_i32 : i32
  }
  func.func @transform_2(%arg0: i32) -> i32 {
    %c0_i32 = arith.constant 0 : i32
    %c0_i32_0 = arith.constant 0 : i32
    return %c0_i32 : i32
  }
  func.func @transform_3(%arg0: i32) -> i32 {
    %c0_i32 = arith.constant 0 : i32
    %c0_i32_0 = arith.constant 0 : i32
    return %c0_i32 : i32
  }
  func.func @transform_4(%arg0: i32) -> (i32, i32) {
    %c0_i32 = arith.constant 0 : i32
    %c0_i32_0 = arith.constant 0 : i32
    return %arg0, %c0_i32 : i32, i32
  }
  func.func @transform_5(%arg0: i32) -> (i32, i32) {
    %c0_i32 = arith.constant 0 : i32
    %c0_i32_0 = arith.constant 0 : i32
    return %arg0, %c0_i32 : i32, i32
  }
}

</mosaic_0001>

<bundles_post_ra>
// kernel: tpu_custom_call.1
= control target key start
LH: loop header
LB: loop body
LE: loop exit
PB: predicated region body
PF: predicated region fallthrough
CT: control target
= control target key end

     0   :  { %s1376_s0 = inlined_call_operand.vmem [shape: f32[11], index: 0, kind: input, shape index: {}]   ;;  %s1377_s1 = inlined_call_operand.vmem [shape: f32[11], index: 1, kind: input, shape index: {}]   ;;  %s1378_s2 = inlined_call_operand.vmem [shape: f32[121], index: 2, kind: input, shape index: {}]   ;;  %s1379_s3 = inlined_call_operand.<no memory space> [shape: f32[1], index: 3, kind: input, shape index: {}]   ;;  %s1380_s4 = inlined_call_operand.hbm [shape: f32[32,128], index: 4, kind: input, shape index: {}]   ;;  %s1381_s5 = inlined_call_operand.hbm [shape: f32[32,128], index: 5, kind: output, shape index: {}]  }
   0x1   :  { %10 = sst [smem:[#allocation2]] %s1379_s3 }
   0x2   :  { %11 = vsyncpa [#allocation6], 0 }
   0x3   :  { %12 = vsyncpa [#allocation8], 0 }
   0x4   :  { %13 = vsyncpa [#allocation4], 0 }
   0x5   :  { %15 = vsyncpa [#allocation4 + $0x1], 0 }
   0x6   :  { %16 = vsyncpa [#allocation5], 0 }
   0x7   :  { %18 = vsyncpa [#allocation5 + $0x1], 0  ;;  %s1084_s20 = smov 0   ;;  %s1086_s21 = smov 0  }
   0x8   :  { %s1088_s22 = smov 0   ;;  %s1090_s23 = smov 0  }
   0x9 LB: > { %s1105_s3 = sadd.s32 4294967295, %s1030_s23   ;;  %s688_s24 = sadd.s32 4294967294, %s1030_s23   ;;  %s1030_s23 = sphi %s1090_s23, %s1394_s23   ;;  %s1026_s22 = sphi %s1088_s22, %s1393_s22   ;;  %s1022_s21 = sphi %s1086_s21, %s1392_s21   ;;  %s1018_s20 = sphi %s1084_s20, %s1391_s20  }
   0xa   : > { %p128_p0 = scmp.ne.s32.totalorder %s1022_s21, %s1018_s20  ;;  %p129_p1 = scmp.eq.s32.totalorder %s1105_s3, 0 }
   0xb   : > { %p152_p2 = scmp.eq.s32.totalorder %s1105_s3, 1  ;;  %p158_p3 = scmp.eq.s32.totalorder %s688_s24, 1 }
   0xc   : > { %p1114_p4 = por %p129_p1, %p128_p0  ;;  %p689_p5 = scmp.ge.s32.totalorder %s1030_s23, 1 }
   0xd   : > { %p1119_p6 = por %p158_p3, %p128_p0  ;;  %p165_p7 = scmp.lt.s32.totalorder %s1030_s23, 3 }
   0xe   : > { %s187_s29 = sshll.u32 %s1377_s1, 4  ;;  %s177_s8 = sshll.u32 %s1376_s0, 4  ;;  %s188_s29 = int_to_ptr.vmem [resolvable:$true] %s187_s29  ;;  %s178_s8 = int_to_ptr.vmem [resolvable:$true] %s177_s8 }
   0xf   : > { %p1127_p8 = pnand %p689_p5, %p165_p7  ;;  %s197_s11 = sshll.u32 %s1378_s2, 4  ;;  %s198_s11 = int_to_ptr.vmem [resolvable:$true] %s197_s11 }
  0x10   : > { %s1044_s12 = smov [#allocation7]   ;;  %s1045_s13 = smov [#allocation3]  }
  0x11   : > { %p736_p10 = pneg %p1127_p8  ;;  %s1046_s14 = smov [#allocation9]  }
  0x12   : > { %s1143_s15 = sadd.s32 1, %s1030_s23   ;;  %s115_s17 = sadd.s32 1, %s1026_s22 }
  0x13   : > { %p737_p11 = pnand %p736_p10, %p129_p1  ;;  %s112_s16 = ssub.s32 %s1030_s23, %s1143_s15 }
  0x14   : > { %p113_p12 = scmp.eq.s32.totalorder %s112_s16, 0  ;;  %p122_p13 = scmp.ne.s32.totalorder %s1026_s22, %s1022_s21 }
  0x15   : > { %742 = dma.vmem_to_smem (!%p737_p11), %s188_s29, 16, %s1044_s12, [#allocation8]  }
  0x16   : > { %739 = dma.vmem_to_smem (!%p737_p11), %s178_s8, 16, %s1045_s13, [#allocation6]  }
  0x17   : > { %745 = dma.vmem_to_smem (!%p737_p11), %s198_s11, 16, %s1046_s14, [#allocation8]  }
  0x18   : > { %p123_p0 = scmp.eq.s32.totalorder %s1030_s23, 0  ;;  %p757_p3 = scmp.lt.s32.totalorder %s1030_s23, 2 }
  0x19   : > { %s1153_s18 = scalar_select %p113_p12, %s1026_s22, %s115_s17  }
  0x1a   : > { %p124_p5 = por %p123_p0, %p122_p13  ;;  %p1157_p7 = por %p152_p2, %p122_p13 }
  0x1b   : > { %s211_s24 = sand.u32 1, %s1026_s22   ;;  %s718_s27 = sshll.u32 %s1030_s23, 4 }
  0x1c   : > { %s694_s28 = sshll.u32 %s211_s24, 4  ;;  %s220_s7 = scalar_lea.hbm %s1380_s4, %s718_s27 }
  0x1d   : > { %s221_s8 = sshll.u32 %s220_s7, 4  ;;  %s215_s9 = scalar_lea.vmem [#allocation10], %s694_s28  ;;  %s222_s8 = int_to_ptr.hbm [resolvable:$true] %s221_s8 }
  0x1e   : > { %s223_s10 = sshll.u32 %s215_s9, 4  ;;  %p1168_p10 = pnand %p757_p3, %p124_p5  ;;  %s224_s10 = int_to_ptr.vmem [resolvable:$true] %s223_s10 }
  0x1f   : > { %s212_s12 = scalar_lea.sflag [#allocation4], %s211_s24  ;;  %s914_s13 = sshra.s32 %s222_s8, 4  ;;  %s915_s13 = int_to_ptr.hbm [resolvable:$true] %s914_s13 }
  0x20   : > { %s916_s14 = scalar_lea.hbm %s915_s13, 16  ;;  %p918_p11 = pneg %p1168_p10 }
  0x21   : > { %p917_p2 = scmp.ne.s32.totalorder %s915_s13, %s916_s14  ;;  %s921_s27 = scalar_lea.hbm %s1380_s4, 32 }
  0x22   : > { %p922_p0 = scmp.lt.s32.totalorder %s915_s13, %s1380_s4  ;;  %p923_p3 = scmp.lt.s32.totalorder %s921_s27, %s916_s14 }
  0x23   : > { %p919_p12 = pnand %p918_p11, %p917_p2 }
  0x24   : > { %p924_p5 = por %p923_p3, %p922_p0 }
  0x25   : > { %p920_p13 = pneg %p919_p12 }
  0x27   : > { %p925_p9 = pnand %p924_p5, %p920_p13 }
  0x29   : > { %928 = shalt.err (!%p925_p9)
}
  0x2a   : > { %s1047_s24 = smov 128   ;;  %s1048_s6 = smov 8  }
  0x2b   : > { %749 = dma.hbm_to_vmem [thread:$0]  (!%p1168_p10), %s222_s8, 256, %s224_s10, %s212_s12, %s1047_s24, %s1047_s24, %s1048_s6  }
  0x2c   : > { %235 = sbr.rel (%p1127_p8) target bundleno = 144 (0x90), region = 40 }
  0x31   : > { %1001 = dma.done.wait (%p129_p1), [#allocation6], 16  }
  0x32   : > { %1003 = vsyncadd (%p129_p1), [#allocation6], 4294967280 }
  0x33   : > { %1005 = dma.done.wait (%p129_p1), [#allocation8], 32  }
  0x34   : > { %1007 = vsyncadd (%p129_p1), [#allocation8], 4294967264  ;;  %s1193_s7 = sand.u32 1, %s1022_s21  }
  0x35   : > { %s701_s30 = sshll.u32 %s1193_s7, 4  ;;  %s253_s8 = scalar_lea.sflag [#allocation4], %s1193_s7 }
  0x36   : > { %s256_s9 = scalar_lea.vmem [#allocation10], %s701_s30 }
  0x37   : > { %1009 = dma.done.wait (%p1114_p4), %s253_s8, 256  }
  0x38   : > { %1011 = vsyncadd (%p1114_p4), %s253_s8, 4294967040 }
  0x39   : > { %262 = sfence }
  0x3a   : > { %s287_s10 = sld [smem:[#allocation2]]  ;;  %v1201_v0 = vld [vmem:[%s256_s9] sm:$0xff]  ;;  %v1203_v1 = vld [vmem:[%s256_s9 + $0x8] sm:$0xff]  ;;  %s1205_s11 = scalar_lea.vmem [#allocation11], %s701_s30 }
  0x3b   : > { %s1211_s12 = smov 0  }
  0x40   : > { %v288_v2 = vstv %s287_s10  }
  0x41   : > { %v1387_v3 = vmov %v288_v2 }
  0x42 LB: >> { %s303_s25 = sld [smem:[#allocation7]]  ;;  %s331_s16 = sadd.s32 11, %s1042_s12  ;;  %s1042_s12 = sphi %s1211_s12, %s296_s12   ;;  %v1038_v2 = vphi %v288_v2, %v1389_v2   ;;  %v1034_v3 = vphi %v1387_v3, %v1388_v3  }
  0x43   : >> { %s703_s13 = sld [smem:[#allocation7 + $0x1]]  ;;  %s354_s27 = sadd.s32 22, %s1042_s12 }
  0x44   : >> { %s299_s14 = sld [smem:[#allocation3 + %s1042_s12]]  ;;  %s377_s6 = sadd.s32 33, %s1042_s12 }
  0x45   : >> { %s1225_s17 = sld [smem:[#allocation9 + %s1042_s12]]  ;;  %s400_s10 = sadd.s32 44, %s1042_s12 }
  0x46   : >> { %s1228_s28 = sld [smem:[#allocation9 + %s331_s16]]  ;;  %s423_s16 = sadd.s32 55, %s1042_s12 }
  0x47   : >> { %s704_s29 = sld [smem:[#allocation7 + $0x2]] }
  0x48   : >> { %s1230_s24 = sld [smem:[#allocation9 + %s354_s27]]  ;;  %v304_v5 = vstv %s303_s25 }
  0x49   : >> { %v326_v6 = vstv %s703_s13  ;;  %s1233_s30 = sld [smem:[#allocation7 + $0x3]] }
  0x4a   : >> { %v300_v4 = vstv %s299_s14  ;;  %s1241_s8 = sld [smem:[#allocation9 + %s377_s6]] }
  0x4b   : >> { %v1236_v7 = vmul.f32 %v300_v4, %v1201_v0  ;;  %v1239_v8 = vmul.f32 %v300_v4, %v1203_v1  ;;  %s1247_s9 = sld [smem:[#allocation7 + $0x4]]  ;;  %v312_v18 = vstv %s1225_s17  ;;  %s446_s17 = sadd.s32 66, %s1042_s12 }
  0x4c   : >> { %v335_v19 = vstv %s1228_s28  ;;  %s1256_s25 = sld [smem:[#allocation9 + %s400_s10]]  ;;  %s515_s10 = sadd.s32 99, %s1042_s12 }
  0x4d   : >> { %v305_v9 = vsub.f32 %v1236_v7, %v304_v5  ;;  %v306_v10 = vsub.f32 %v1239_v8, %v304_v5  ;;  %v327_v11 = vsub.f32 %v1236_v7, %v326_v6  ;;  %v328_v12 = vsub.f32 %v1239_v8, %v326_v6  ;;  %s1263_s13 = sld [smem:[#allocation7 + $0x5]] }
  0x4e   : >> { %v349_v13 = vstv %s704_s29  ;;  %v358_v20 = vstv %s1230_s24  ;;  %s1267_s14 = sld [smem:[#allocation7 + $0x6]]  ;;  %s469_s24 = sadd.s32 77, %s1042_s12 }
  0x4f   : >> { %v307_v14 = vmul.f32 %v305_v9, %v305_v9  ;;  %v308_v15 = vmul.f32 %v306_v10, %v306_v10  ;;  %v329_v16 = vmul.f32 %v327_v11, %v327_v11  ;;  %v330_v17 = vmul.f32 %v328_v12, %v328_v12  ;;  %s1277_s27 = sld [smem:[#allocation9 + %s423_s16]]  ;;  %s538_s16 = sadd.s32 110, %s1042_s12 }
  0x50   : >> { %v350_v23 = vsub.f32 %v1236_v7, %v349_v13  ;;  %v351_v24 = vsub.f32 %v1239_v8, %v349_v13  ;;  %v372_v28 = vstv %s1233_s30  ;;  %v381_v32 = vstv %s1241_s8  ;;  %s1281_s28 = sld [smem:[#allocation9 + %s446_s17]]  ;;  %s492_s30 = sadd.s32 88, %s1042_s12 }
  0x51   : >> { %v315_v21 = vmul.f32 -0.5, %v307_v14  ;;  %v316_v22 = vmul.f32 -0.5, %v308_v15  ;;  %v310_v25 = vsub.f32 1.0, %v307_v14  ;;  %v338_v26 = vmul.f32 -0.5, %v329_v16  ;;  %s1289_s29 = sld [smem:[#allocation7 + $0x7]]  ;;  %s296_s12 = sadd.s32 1, %s1042_s12  }
  0x52   : >> { %v339_v27 = vmul.f32 -0.5, %v330_v17  ;;  %v311_v29 = vsub.f32 1.0, %v308_v15  ;;  %v333_v33 = vsub.f32 1.0, %v329_v16  ;;  %v334_v34 = vsub.f32 1.0, %v330_v17  ;;  %s1296_s6 = sld [smem:[#allocation7 + $0x8]]  ;;  %p293_p1 = scmp.ge.s32.totalorder %s296_s12, 11  }
  0x53   : >> { %v317_v30 = vmul.f32 1.442695, %v315_v21  ;;  %v319_v31 = vmul.f32 1.442695, %v316_v22  ;;  %v340_v35 = vmul.f32 1.442695, %v338_v26  ;;  %v352_v37 = vmul.f32 %v350_v23, %v350_v23 }
  0x54   : >> { %v342_v36 = vmul.f32 1.442695, %v339_v27  ;;  %v353_v38 = vmul.f32 %v351_v24, %v351_v24  ;;  %v373_v39 = vsub.f32 %v1236_v7, %v372_v28  ;;  %v313_v40 = vmul.f32 %v312_v18, %v310_v25  ;;  %s1299_s8 = sld [smem:[#allocation9 + %s469_s24]] }
  0x55   : >> { %825 = vpow2.f32 %v317_v30  ;;  %v374_v41 = vsub.f32 %v1239_v8, %v372_v28  ;;  %v395_v42 = vstv %s1247_s9  ;;  %v314_v43 = vmul.f32 %v312_v18, %v311_v29  ;;  %s1305_s9 = sld [smem:[#allocation7 + $0x9]] }
  0x56   : >> { %827 = vpow2.f32 %v319_v31  ;;  %v356_v44 = vsub.f32 1.0, %v352_v37  ;;  %v361_v45 = vmul.f32 -0.5, %v352_v37  ;;  %v362_v46 = vmul.f32 -0.5, %v353_v38  ;;  %s1327_s17 = sld [smem:[#allocation9 + %s538_s16]] }
  0x57   : >> { %829 = vpow2.f32 %v340_v35  ;;  %v375_v47 = vmul.f32 %v373_v39, %v373_v39  ;;  %v376_v48 = vmul.f32 %v374_v41, %v374_v41  ;;  %v336_v49 = vmul.f32 %v335_v19, %v333_v33 }
  0x58   : >> { %831 = vpow2.f32 %v342_v36  ;;  %v337_v50 = vmul.f32 %v335_v19, %v334_v34  ;;  %v363_v51 = vmul.f32 1.442695, %v361_v45  ;;  %v396_v52 = vsub.f32 %v1236_v7, %v395_v42 }
  0x59   : >> { %v357_v53 = vsub.f32 1.0, %v353_v38  ;;  %v365_v54 = vmul.f32 1.442695, %v362_v46  ;;  %v384_v55 = vmul.f32 -0.5, %v375_v47  ;;  %v404_v56 = vstv %s1256_s25  ;;  %s1310_s25 = sld [smem:[#allocation9 + %s515_s10]] }
  0x5a   : >> { %833 = vpow2.f32 %v363_v51  ;;  %v385_v58 = vmul.f32 -0.5, %v376_v48  ;;  %v397_v59 = vsub.f32 %v1239_v8, %v395_v42  ;;  %v398_v60 = vmul.f32 %v396_v52, %v396_v52 }
  0x5b   : >> { %v826_v57 = vpop.eup %825  ;;  %v359_v63 = vmul.f32 %v358_v20, %v356_v44  ;;  %835 = vpow2.f32 %v365_v54  ;;  %v379_v4 = vsub.f32 1.0, %v375_v47  ;;  %v386_v9 = vmul.f32 1.442695, %v384_v55 }
  0x5c   : >> { %v828_v61 = vpop.eup %827  ;;  %v321_v62 = vmul.f32 %v826_v57, %v313_v40  ;;  %v388_v10 = vmul.f32 1.442695, %v385_v58  ;;  %v399_v11 = vmul.f32 %v397_v59, %v397_v59  ;;  %v360_v15 = vmul.f32 %v358_v20, %v357_v53 }
  0x5d   : >> { %v830_v5 = vpop.eup %829  ;;  %v322_v6 = vmul.f32 %v828_v61, %v314_v43  ;;  %v407_v16 = vmul.f32 -0.5, %v398_v60  ;;  %v380_v19 = vsub.f32 1.0, %v376_v48  ;;  %837 = vpow2.f32 %v386_v9 }
  0x5e   : >> { %v832_v12 = vpop.eup %831  ;;  %v323_v13 = vadd.f32 %v1038_v2, %v321_v62  ;;  %v344_v14 = vmul.f32 %v830_v5, %v336_v49  ;;  %v382_v21 = vmul.f32 %v381_v32, %v379_v4  ;;  %839 = vpow2.f32 %v388_v10 }
  0x5f   : >> { %v324_v17 = vadd.f32 %v1034_v3, %v322_v6  ;;  %v345_v18 = vmul.f32 %v832_v12, %v337_v50  ;;  %v402_v22 = vsub.f32 1.0, %v398_v60  ;;  %v408_v23 = vmul.f32 -0.5, %v399_v11 }
  0x60   : >> { %v834_v2 = vpop.eup %833  ;;  %v346_v20 = vadd.f32 %v344_v14, %v323_v13  ;;  %v409_v25 = vmul.f32 1.442695, %v407_v16  ;;  %v418_v3 = vstv %s1263_s13  ;;  %v383_v33 = vmul.f32 %v381_v32, %v380_v19  ;;  %s1308_s13 = sld [smem:[#allocation9 + %s492_s30]] }
  0x61   : >> { %v347_v24 = vadd.f32 %v345_v18, %v324_v17  ;;  %v836_v26 = vpop.eup %835  ;;  %v367_v27 = vmul.f32 %v834_v2, %v359_v63  ;;  %v411_v28 = vmul.f32 1.442695, %v408_v23  ;;  %v419_v29 = vsub.f32 %v1236_v7, %v418_v3 }
  0x62   : >> { %v420_v30 = vsub.f32 %v1239_v8, %v418_v3  ;;  %v368_v31 = vmul.f32 %v836_v26, %v360_v15  ;;  %841 = vpow2.f32 %v409_v25  ;;  %v441_v34 = vstv %s1267_s14  ;;  %s1319_s14 = sld [smem:[#allocation7 + $0xa]] }
  0x63   : >> { %v403_v35 = vsub.f32 1.0, %v399_v11  ;;  %843 = vpow2.f32 %v411_v28  ;;  %v421_v36 = vmul.f32 %v419_v29, %v419_v29  ;;  %v838_v38 = vpop.eup %837  ;;  %v405_v39 = vmul.f32 %v404_v56, %v402_v22 }
  0x64   : >> { %v422_v37 = vmul.f32 %v420_v30, %v420_v30  ;;  %v442_v40 = vsub.f32 %v1236_v7, %v441_v34  ;;  %v443_v41 = vsub.f32 %v1239_v8, %v441_v34  ;;  %v840_v32 = vpop.eup %839  ;;  %v369_v42 = vadd.f32 %v367_v27, %v346_v20 }
  0x65   : >> { %v370_v43 = vadd.f32 %v368_v31, %v347_v24  ;;  %v390_v44 = vmul.f32 %v838_v38, %v382_v21  ;;  %v430_v45 = vmul.f32 -0.5, %v421_v36  ;;  %v391_v46 = vmul.f32 %v840_v32, %v383_v33 }
  0x66   : >> { %v431_v47 = vmul.f32 -0.5, %v422_v37  ;;  %v444_v48 = vmul.f32 %v442_v40, %v442_v40  ;;  %v445_v49 = vmul.f32 %v443_v41, %v443_v41  ;;  %v406_v50 = vmul.f32 %v404_v56, %v403_v35 }
  0x67   : >> { %v427_v51 = vstv %s1277_s27  ;;  %v432_v52 = vmul.f32 1.442695, %v430_v45  ;;  %v450_v53 = vstv %s1281_s28  ;;  %v425_v55 = vsub.f32 1.0, %v421_v36  ;;  %s719_s27 = sshll.u32 (%p293_p1), %s1105_s3, 4  ;;  %s964_s3 = scalar_lea.hbm (%p293_p1), %s1381_s5, 32 }
  0x68   : >> { %v842_v54 = vpop.eup %841  ;;  %v426_v57 = vsub.f32 1.0, %v422_v37  ;;  %v434_v58 = vmul.f32 1.442695, %v431_v47  ;;  %v448_v59 = vsub.f32 1.0, %v444_v48  ;;  %v449_v61 = vsub.f32 1.0, %v445_v49  ;;  %s569_s24 = scalar_lea.hbm (%p293_p1), %s1381_s5, %s719_s27 }
  0x69   : >> { %v844_v60 = vpop.eup %843  ;;  %845 = vpow2.f32 %v432_v52  ;;  %v453_v62 = vmul.f32 -0.5, %v444_v48  ;;  %v454_v63 = vmul.f32 -0.5, %v445_v49  ;;  %v392_v56 = vadd.f32 %v390_v44, %v369_v42  ;;  %s572_s30 = sshll.u32 (%p293_p1), %s569_s24, 4  ;;  %s573_s30 = int_to_ptr.hbm [resolvable:$true] %s572_s30 }
  0x6a   : >> { %v393_v4 = vadd.f32 %v391_v46, %v370_v43  ;;  %v413_v5 = vmul.f32 %v842_v54, %v405_v39  ;;  %847 = vpow2.f32 %v434_v58  ;;  %v414_v6 = vmul.f32 %v844_v60, %v406_v50  ;;  %s958_s12 = sshra.s32 (%p293_p1), %s573_s30, 4  ;;  %s959_s12 = int_to_ptr.hbm [resolvable:$true] %s958_s12 }
  0x6b   : >> { %v455_v9 = vmul.f32 1.442695, %v453_v62  ;;  %v457_v10 = vmul.f32 1.442695, %v454_v63  ;;  %v464_v11 = vstv %s1289_s29  ;;  %v428_v12 = vmul.f32 %v427_v51, %v425_v55  ;;  %p965_p10 = scmp.lt.s32.totalorder (%p293_p1), %s959_s12, %s1381_s5 }
  0x6c   : >> { %v429_v13 = vmul.f32 %v427_v51, %v426_v57  ;;  %v465_v14 = vsub.f32 %v1236_v7, %v464_v11  ;;  %v466_v15 = vsub.f32 %v1239_v8, %v464_v11  ;;  %v451_v16 = vmul.f32 %v450_v53, %v448_v59 }
  0x6d   : >> { %v452_v17 = vmul.f32 %v450_v53, %v449_v61  ;;  %849 = vpow2.f32 %v455_v9  ;;  %v487_v18 = vstv %s1296_s6  ;;  %v415_v2 = vadd.f32 %v413_v5, %v392_v56  ;;  %s570_s6 = sshll.u32 (%p293_p1), %s1205_s11, 4  ;;  %s571_s6 = int_to_ptr.vmem [resolvable:$true] %s570_s6 }
  0x6e   : >> { %851 = vpow2.f32 %v457_v10  ;;  %v467_v19 = vmul.f32 %v465_v14, %v465_v14  ;;  %v468_v21 = vmul.f32 %v466_v15, %v466_v15  ;;  %v488_v22 = vsub.f32 %v1236_v7, %v487_v18 }
  0x6f   : >> { %v846_v23 = vpop.eup %845  ;;  %v416_v20 = vadd.f32 %v414_v6, %v393_v4  ;;  %v489_v24 = vsub.f32 %v1239_v8, %v487_v18  ;;  %v510_v25 = vstv %s1305_s9  ;;  %v473_v27 = vstv %s1299_s8  ;;  %s558_s8 = scalar_lea.sflag (%p293_p1), [#allocation5], %s1193_s7  ;;  %s960_s9 = scalar_lea.hbm (%p293_p1), %s959_s12, 16 }
  0x70   : >> { %v848_v3 = vpop.eup %847  ;;  %v436_v26 = vmul.f32 %v846_v23, %v428_v12  ;;  %v476_v28 = vmul.f32 -0.5, %v467_v19  ;;  %v496_v29 = vstv %s1308_s13  ;;  %v477_v31 = vmul.f32 -0.5, %v468_v21  ;;  %p961_p4 = scmp.ne.s32.totalorder (%p293_p1), %s959_s12, %s960_s9  ;;  %p966_p2 = scmp.lt.s32.totalorder (%p293_p1), %s964_s3, %s960_s9 }
  0x71   : >> { %v437_v30 = vmul.f32 %v848_v3, %v429_v13  ;;  %v490_v33 = vmul.f32 %v488_v22, %v488_v22  ;;  %v491_v34 = vmul.f32 %v489_v24, %v489_v24  ;;  %v511_v36 = vsub.f32 %v1236_v7, %v510_v25 }
  0x72   : >> { %v478_v35 = vmul.f32 1.442695, %v476_v28  ;;  %v512_v37 = vsub.f32 %v1239_v8, %v510_v25  ;;  %v519_v38 = vstv %s1310_s25  ;;  %v438_v40 = vadd.f32 %v436_v26, %v415_v2  ;;  %p962_p8 = pnand (%p293_p1), %p961_p4, %p1157_p7  ;;  %p967_p11 = por (%p293_p1), %p966_p2, %p965_p10 }
  0x73   : >> { %v850_v39 = vpop.eup %849  ;;  %v471_v41 = vsub.f32 1.0, %v467_v19  ;;  %v472_v32 = vsub.f32 1.0, %v468_v21  ;;  %v480_v42 = vmul.f32 1.442695, %v477_v31  ;;  %v494_v44 = vsub.f32 1.0, %v490_v33 }
  0x74   : >> { %v852_v43 = vpop.eup %851  ;;  %853 = vpow2.f32 %v478_v35  ;;  %v499_v45 = vmul.f32 -0.5, %v490_v33  ;;  %v500_v46 = vmul.f32 -0.5, %v491_v34  ;;  %v439_v47 = vadd.f32 %v437_v30, %v416_v20  ;;  %p963_p9 = pneg (%p293_p1), %p962_p8 }
  0x75   : >> { %v459_v48 = vmul.f32 %v850_v39, %v451_v16  ;;  %855 = vpow2.f32 %v480_v42  ;;  %v495_v49 = vsub.f32 1.0, %v491_v34  ;;  %v460_v50 = vmul.f32 %v852_v43, %v452_v17 }
  0x76   : >> { %v501_v51 = vmul.f32 1.442695, %v499_v45  ;;  %v503_v52 = vmul.f32 1.442695, %v500_v46  ;;  %v513_v53 = vmul.f32 %v511_v36, %v511_v36  ;;  %v474_v54 = vmul.f32 %v473_v27, %v471_v41  ;;  %p968_p12 = pnand (%p293_p1), %p967_p11, %p963_p9 }
  0x77   : >> { %v475_v55 = vmul.f32 %v473_v27, %v472_v32  ;;  %v514_v57 = vmul.f32 %v512_v37, %v512_v37  ;;  %v533_v58 = vstv %s1319_s14  ;;  %v497_v59 = vmul.f32 %v496_v29, %v494_v44 }
  0x78   : >> { %857 = vpow2.f32 %v501_v51  ;;  %v522_v60 = vmul.f32 -0.5, %v513_v53  ;;  %v534_v61 = vsub.f32 %v1236_v7, %v533_v58  ;;  %v461_v62 = vadd.f32 %v459_v48, %v438_v40 }
  0x79   : >> { %859 = vpow2.f32 %v503_v52  ;;  %v523_v63 = vmul.f32 -0.5, %v514_v57  ;;  %v535_v56 = vsub.f32 %v1239_v8, %v533_v58  ;;  %v462_v5 = vadd.f32 %v460_v50, %v439_v47 }
  0x7a   : >> { %v854_v4 = vpop.eup %853  ;;  %v498_v6 = vmul.f32 %v496_v29, %v495_v49  ;;  %v524_v9 = vmul.f32 1.442695, %v522_v60  ;;  %v536_v10 = vmul.f32 %v534_v61, %v534_v61  ;;  %v517_v13 = vsub.f32 1.0, %v513_v53 }
  0x7b   : >> { %v856_v11 = vpop.eup %855  ;;  %v482_v12 = vmul.f32 %v854_v4, %v474_v54  ;;  %v526_v14 = vmul.f32 1.442695, %v523_v63  ;;  %v537_v15 = vmul.f32 %v535_v56, %v535_v56  ;;  %v518_v17 = vsub.f32 1.0, %v514_v57 }
  0x7c   : >> { %v483_v16 = vmul.f32 %v856_v11, %v475_v55  ;;  %861 = vpow2.f32 %v524_v9  ;;  %v545_v7 = vmul.f32 -0.5, %v536_v10  ;;  %v542_v22 = vstv %s1327_s17 }
  0x7d   : >> { %v484_v18 = vadd.f32 %v482_v12, %v461_v62  ;;  %863 = vpow2.f32 %v526_v14  ;;  %v546_v19 = vmul.f32 -0.5, %v537_v15  ;;  %v520_v24 = vmul.f32 %v519_v38, %v517_v13 }
  0x7e   : >> { %v858_v21 = vpop.eup %857  ;;  %v485_v8 = vadd.f32 %v483_v16, %v462_v5  ;;  %v547_v23 = vmul.f32 1.442695, %v545_v7  ;;  %v540_v25 = vsub.f32 1.0, %v536_v10  ;;  %v521_v27 = vmul.f32 %v519_v38, %v518_v17 }
  0x7f   : >> { %v860_v2 = vpop.eup %859  ;;  %v505_v20 = vmul.f32 %v858_v21, %v497_v59  ;;  %v549_v3 = vmul.f32 1.442695, %v546_v19  ;;  %v541_v28 = vsub.f32 1.0, %v537_v15 }
  0x80   : >> { %v506_v26 = vmul.f32 %v860_v2, %v498_v6  ;;  %865 = vpow2.f32 %v547_v23  ;;  %v543_v35 = vmul.f32 %v542_v22, %v540_v25 }
  0x81   : >> { %v507_v29 = vadd.f32 %v505_v20, %v484_v18  ;;  %867 = vpow2.f32 %v549_v3  ;;  %v544_v37 = vmul.f32 %v542_v22, %v541_v28 }
  0x82   : >> { %v862_v30 = vpop.eup %861  ;;  %v508_v31 = vadd.f32 %v506_v26, %v485_v8 }
  0x83   : >> { %v864_v33 = vpop.eup %863  ;;  %v528_v34 = vmul.f32 %v862_v30, %v520_v24 }
  0x84   : >> { %v529_v36 = vmul.f32 %v864_v33, %v521_v27 }
  0x85   : >> { %v530_v39 = vadd.f32 %v528_v34, %v507_v29 }
  0x86   : >> { %v866_v40 = vpop.eup %865  ;;  %v531_v41 = vadd.f32 %v529_v36, %v508_v31 }
  0x87   : >> { %v868_v32 = vpop.eup %867  ;;  %v551_v42 = vmul.f32 %v866_v40, %v543_v35 }
  0x88   : >> { %v552_v43 = vmul.f32 %v868_v32, %v544_v37  ;;  %295 = sbr.rel (!%p293_p1) target bundleno = 66 (0x42), region = 105 }
  0x89   : >> { %v553_v44 = vadd.f32 %v551_v42, %v530_v39  }
  0x8a   : >> { %v554_v45 = vadd.f32 %v552_v43, %v531_v41  }
  0x8b   : >> { %v1389_v2 = vmov %v553_v44  ;;  %555 = vst [vmem:[%s1205_s11] sm:$0xff] (%p293_p1), %v553_v44 }
  0x8c   : >> { %v1388_v3 = vmov %v554_v45  ;;  %556 = vst [vmem:[%s1205_s11 + $0x8] sm:$0xff] (%p293_p1), %v554_v45 }
  0x8d   : > { %971 = shalt.err (!%p968_p12)
}
  0x8e   : > { %s1049_s7 = smov 128   ;;  %s1050_s11 = smov 8  }
  0x8f   : > { %734 = dma.vmem_to_hbm [thread:$0]  (%p1157_p7), %s571_s6, 256, %s573_s30, %s558_s8, %s1049_s7, %s1049_s7, %s1050_s11  }
  0x90 PF: > { %s587_s16 = sand.u32 1, %s1018_s20   ;;  %p1390_p13 = scmp.ge.s32.totalorder %s1030_s23, 2 }
  0x91   : > { %s588_s17 = scalar_lea.sflag [#allocation5], %s587_s16 }
  0x92   : > { %p751_p0 = pnand %p1390_p13, %p1119_p6 }
  0x94   : > { %p752_p3 = pneg %p751_p0 }
  0x96   : > { %1013 = dma.done.wait (%p752_p3), %s588_s17, 256  }
  0x97   : > { %1015 = vsyncadd (%p752_p3), %s588_s17, 4294967040  ;;  %p21_p5 = scmp.ge.s32.totalorder %s1143_s15, 4   ;;  %s1391_s20 = smov %s1022_s21 }
  0x98   : > { %s1392_s21 = smov %s1026_s22  ;;  %s1393_s22 = smov %s1153_s18 }
  0x99   : > { %s1394_s23 = smov %s1143_s15  ;;  %23 = sbr.rel (!%p21_p5) target bundleno = 9 (0x9), region = 116 }
  0x9e   :  { %594 = vsyncpa [#allocation4], 1 }
  0x9f   :  { %596 = vsyncpa [#allocation4 + $0x1], 1 }
  0xa0   :  { %597 = vsyncpa [#allocation5], 1 }
  0xa1   :  { %599 = vsyncpa [#allocation5 + $0x1], 1 }
  0xa2   :  { %600 = vsyncpa [#allocation6], 1 }
  0xa3   :  { %602 = vsyncpa [#allocation6 + $0x1], 1 }
  0xa4   :  { %603 = vsyncpa [#allocation8], 1 }

</bundles_post_ra>
